<compile_context>
chip_gen: v5e
topology: v5e:2x2
jax: 0.10.0
libtpu: 0.0.40
codegen_flags: <defaults>
</compile_context>

<pallas_src>
import functools

import jax
import jax.numpy as jnp
from jax.experimental import pallas as pl
from jax.experimental.pallas import tpu as pltpu

_MAX_TILE = 1024       # cap per review: <= ~4 MiB per tile temporary (v7x-safe)
_PAD_SENTINEL = 1e30   # padded preds -> relu(diff)==0 ; padded y -> mask False


def _round_up(x, m):
    return ((x + m - 1) // m) * m


def _dense_ranking_loss_kernel(p_row_ref, p_col_ref, y_row_ref, y_col_ref,
                               out_ref, *, tile_i, tile_j):
    j = pl.program_id(1)

    @pl.when(j == 0)
    def _():
        out_ref[...] = jnp.zeros_like(out_ref)

    p_row = p_row_ref[...]          # (1, tile_j):  preds[j]
    p_col = p_col_ref[...]          # (tile_i, 1):  preds[i] + margin (folded)
    y_row = y_row_ref[...]          # (1, tile_j):  y[j]
    y_col = y_col_ref[...]          # (tile_i, 1):  y[i]

    # error[i, j] = relu(preds[j] - preds[i] - margin) if y[j] < y[i] else 0
    diff = p_row - p_col                                         # (tile_i, tile_j)
    err = jnp.where(y_row < y_col, jnp.maximum(diff, 0.0), 0.0)

    # Partial reduction with pure vreg-elementwise adds over the leading
    # sublane-group axis (layout-preserving reshape); no cross-lane / XLU work
    # in the hot loop.  Result stays lane-dense: (8, tile_j).
    partial = jnp.sum(err.reshape(tile_i // 8, 8, tile_j), axis=0)
    out_ref[...] += partial[None, :, :]


def dense_ranking_loss(preds, y, margin=None):
    """Pallas implementation of DenseRankingLoss.forward."""
    if margin is not None and margin < 0:
        # TODO(synk): negative margins add |margin| to every (even masked /
        # padded) pair; supporting them would need an explicit validity mask.
        raise ValueError("dense_ranking_loss requires margin is None or margin >= 0")

    n = preds.shape[0]
    preds = preds.astype(jnp.float32)
    y = y.astype(jnp.float32)

    tile_i = min(_MAX_TILE, _round_up(n, 8))      # sublane axis, multiple of 8
    tile_j = min(_MAX_TILE, _round_up(n, 128))    # lane axis, multiple of 128
    n_pad_i = _round_up(n, tile_i)
    n_pad_j = _round_up(n, tile_j)
    num_i = n_pad_i // tile_i
    num_j = n_pad_j // tile_j

    def _pad(v, total):
        if total == n:
            return v
        return jnp.pad(v, (0, total - n), mode="constant",
                       constant_values=_PAD_SENTINEL)

    margin_f = 0.0 if margin is None else float(margin)
    p_row = _pad(preds, n_pad_j).reshape(1, n_pad_j)
    p_col = (_pad(preds, n_pad_i) + margin_f).reshape(n_pad_i, 1)  # margin folded
    y_row = _pad(y, n_pad_j).reshape(1, n_pad_j)
    y_col = _pad(y, n_pad_i).reshape(n_pad_i, 1)

    kernel = functools.partial(_dense_ranking_loss_kernel,
                               tile_i=tile_i, tile_j=tile_j)

    grid_spec = pltpu.PrefetchScalarGridSpec(
        num_scalar_prefetch=0,
        grid=(num_i, num_j),                                   # reduction (j) last
        in_specs=[
            pl.BlockSpec((1, tile_j), lambda i, j: (0, j)),    # p_row
            pl.BlockSpec((tile_i, 1), lambda i, j: (i, 0)),    # p_col (+margin)
            pl.BlockSpec((1, tile_j), lambda i, j: (0, j)),    # y_row
            pl.BlockSpec((tile_i, 1), lambda i, j: (i, 0)),    # y_col
        ],
        out_specs=pl.BlockSpec((1, 8, tile_j), lambda i, j: (i, 0, 0)),
    )

    partials = pl.pallas_call(
        kernel,
        out_shape=jax.ShapeDtypeStruct((num_i, 8, tile_j), jnp.float32),
        grid_spec=grid_spec,
        compiler_params=pltpu.CompilerParams(
            dimension_semantics=("parallel", "arbitrary"),
            vmem_limit_bytes=32 * 1024 * 1024,
        ),
        cost_estimate=pl.CostEstimate(
            flops=4 * n_pad_i * n_pad_j,
            transcendentals=0,
            bytes_accessed=8 * (n_pad_i + n_pad_j) + 4 * num_i * 8 * tile_j,
        ),
    )(p_row, p_col, y_row, y_col)

    # Tiny final cross-lane reduce + normalization outside the kernel.
    return jnp.sum(partials) / jnp.float32(n)


def _reference_loss(preds, y, margin=None):
    """Plain-JAX mirror of the PyTorch module."""
    n = preds.shape[0]
    diff_mat = preds[None, :] - preds[:, None]
    big_mat = jnp.maximum(diff_mat, 0.0)
    gt_small_mat = (y[None, :] - y[:, None] < 0.0).astype(jnp.float32)
    error = big_mat * gt_small_mat
    if margin is not None:
        error = jnp.maximum(error - margin, 0.0)
    return error.sum() / n


if __name__ == "__main__":
    key = jax.random.PRNGKey(0)

    def _check(n, margin):
        k1, k2 = jax.random.split(jax.random.fold_in(key, n), 2)
        preds = jax.random.normal(k1, (n,), dtype=jnp.float32)
        y = jax.random.normal(k2, (n,), dtype=jnp.float32)
        out = dense_ranking_loss(preds, y, margin=margin)
        jax.block_until_ready(out)
        ref = _reference_loss(preds, y, margin=margin)
        assert jnp.allclose(out, ref, atol=1e-3, rtol=1e-4), (n, margin, out, ref)

    # Small shape implied by the module (length-n score vectors) + margin branch.
    _check(8, None)
    _check(8, 0.05)
    # Non-aligned n exercises the sentinel padding path.
    _check(50, 0.1)
    # Larger n exercises the 2-D grid and resident-output accumulator path.
    _check(1100, None)

    print("KERNEL_OK")
</pallas_src>

<mosaic_0001>
module attributes {stable_mosaic.version = 11 : i64} {
  func.func @_dense_ranking_loss_kernel(%arg0: i32, %arg1: i32, %arg2: memref<1x128xf32, #tpu.memory_space<vmem>>, %arg3: memref<8x1xf32, #tpu.memory_space<vmem>>, %arg4: memref<1x128xf32, #tpu.memory_space<vmem>>, %arg5: memref<8x1xf32, #tpu.memory_space<vmem>>, %arg6: memref<1x8x128xf32, #tpu.memory_space<vmem>>) attributes {dimension_semantics = [#tpu.dimension_semantics<parallel>, #tpu.dimension_semantics<arbitrary>], iteration_bounds = array<i64: 1, 1>, scalar_prefetch = 0 : i64, scratch_operands = 0 : i64, tpu.core_type = #tpu.core_type<tc>, window_params = [{transform_indices = @transform_0, window_bounds = array<i64: 1, 128>}, {transform_indices = @transform_1, window_bounds = array<i64: 8, 1>}, {transform_indices = @transform_2, window_bounds = array<i64: 1, 128>}, {transform_indices = @transform_3, window_bounds = array<i64: 8, 1>}, {transform_indices = @transform_4, window_bounds = array<i64: 1, 8, 128>}]} {
    %c0_i32 = arith.constant 0 : i32
    %0 = arith.cmpi eq, %arg1, %c0_i32 : i32
    %1 = arith.extui %0 : i1 to i32
    %c0_i32_0 = arith.constant 0 : i32
    %2 = arith.cmpi ne, %1, %c0_i32_0 : i32
    scf.if %2 {
      %cst_16 = arith.constant 0.000000e+00 : f32
      %23 = vector.broadcast %cst_16 : f32 to vector<1x8x128xf32>
      %c0_17 = arith.constant 0 : index
      %c0_18 = arith.constant 0 : index
      %c0_19 = arith.constant 0 : index
      %24 = vector.load %arg6[%c0_17, %c0_18, %c0_19] : memref<1x8x128xf32, #tpu.memory_space<vmem>>, vector<1x8x128xf32>
      tpu.vector_store %arg6[%c0_17, %c0_18, %c0_19], %23 {strides = array<i32>} : memref<1x8x128xf32, #tpu.memory_space<vmem>>, vector<1x8x128xf32>,
    } else {
    }
    %c0 = arith.constant 0 : index
    %c0_1 = arith.constant 0 : index
    %3 = vector.load %arg2[%c0, %c0_1] : memref<1x128xf32, #tpu.memory_space<vmem>>, vector<1x128xf32>
    %c0_2 = arith.constant 0 : index
    %c0_3 = arith.constant 0 : index
    %4 = vector.load %arg3[%c0_2, %c0_3] : memref<8x1xf32, #tpu.memory_space<vmem>>, vector<8x1xf32>
    %c0_4 = arith.constant 0 : index
    %c0_5 = arith.constant 0 : index
    %5 = vector.load %arg4[%c0_4, %c0_5] : memref<1x128xf32, #tpu.memory_space<vmem>>, vector<1x128xf32>
    %c0_6 = arith.constant 0 : index
    %c0_7 = arith.constant 0 : index
    %6 = vector.load %arg5[%c0_6, %c0_7] : memref<8x1xf32, #tpu.memory_space<vmem>>, vector<8x1xf32>
    %7 = vector.broadcast %3 : vector<1x128xf32> to vector<8x128xf32>
    %8 = vector.broadcast %4 : vector<8x1xf32> to vector<8x128xf32>
    %9 = arith.subf %7, %8 : vector<8x128xf32>
    %10 = vector.broadcast %5 : vector<1x128xf32> to vector<8x128xf32>
    %11 = vector.broadcast %6 : vector<8x1xf32> to vector<8x128xf32>
    %12 = arith.cmpf olt, %10, %11 : vector<8x128xf32>
    %cst = arith.constant 0.000000e+00 : f32
    %13 = vector.broadcast %cst : f32 to vector<8x128xf32>
    %14 = arith.maximumf %9, %13 : vector<8x128xf32>
    %cst_8 = arith.constant 0.000000e+00 : f32
    %15 = vector.broadcast %cst_8 : f32 to vector<8x128xf32>
    %16 = arith.select %12, %14, %15 : vector<8x128xi1>, vector<8x128xf32>
    %17 = vector.shape_cast %16 : vector<8x128xf32> to vector<1x8x128xf32>
    %cst_9 = arith.constant dense<0.000000e+00> : vector<8x128xf32>
    %18 = vector.multi_reduction <add>, %17, %cst_9 [0] : vector<1x8x128xf32> to vector<8x128xf32>
    %c0_10 = arith.constant 0 : index
    %c0_11 = arith.constant 0 : index
    %c0_12 = arith.constant 0 : index
    %19 = vector.load %arg6[%c0_10, %c0_11, %c0_12] : memref<1x8x128xf32, #tpu.memory_space<vmem>>, vector<1x8x128xf32>
    %20 = vector.shape_cast %18 : vector<8x128xf32> to vector<1x8x128xf32>
    %21 = arith.addf %19, %20 : vector<1x8x128xf32>
    %c0_13 = arith.constant 0 : index
    %c0_14 = arith.constant 0 : index
    %c0_15 = arith.constant 0 : index
    %22 = vector.load %arg6[%c0_13, %c0_14, %c0_15] : memref<1x8x128xf32, #tpu.memory_space<vmem>>, vector<1x8x128xf32>
    tpu.vector_store %arg6[%c0_13, %c0_14, %c0_15], %21 {strides = array<i32>} : memref<1x8x128xf32, #tpu.memory_space<vmem>>, vector<1x8x128xf32>,
    return
  }
  func.func @transform_0(%arg0: i32, %arg1: i32) -> (i32, i32) {
    %c0_i32 = arith.constant 0 : i32
    %c0_i32_0 = arith.constant 0 : i32
    return %c0_i32, %arg1 : i32, i32
  }
  func.func @transform_1(%arg0: i32, %arg1: i32) -> (i32, i32) {
    %c0_i32 = arith.constant 0 : i32
    %c0_i32_0 = arith.constant 0 : i32
    return %arg0, %c0_i32 : i32, i32
  }
  func.func @transform_2(%arg0: i32, %arg1: i32) -> (i32, i32) {
    %c0_i32 = arith.constant 0 : i32
    %c0_i32_0 = arith.constant 0 : i32
    return %c0_i32, %arg1 : i32, i32
  }
  func.func @transform_3(%arg0: i32, %arg1: i32) -> (i32, i32) {
    %c0_i32 = arith.constant 0 : i32
    %c0_i32_0 = arith.constant 0 : i32
    return %arg0, %c0_i32 : i32, i32
  }
  func.func @transform_4(%arg0: i32, %arg1: i32) -> (i32, i32, i32) {
    %c0_i32 = arith.constant 0 : i32
    %c0_i32_0 = arith.constant 0 : i32
    %c0_i32_1 = arith.constant 0 : i32
    return %arg0, %c0_i32, %c0_i32_0 : i32, i32, i32
  }
}

</mosaic_0001>

<bundles_post_ra>
// kernel: tpu_custom_call.1
= control target key start
LH: loop header
LB: loop body
LE: loop exit
PB: predicated region body
PF: predicated region fallthrough
CT: control target
= control target key end

     0   :  { %v99_v1 = vmov 0   ;;  %s141_s0 = inlined_call_operand.vmem [shape: f32[1,128], index: 0, kind: input, shape index: {}]   ;;  %s142_s1 = inlined_call_operand.vmem [shape: f32[8,1], index: 1, kind: input, shape index: {}]   ;;  %s143_s2 = inlined_call_operand.vmem [shape: f32[1,128], index: 2, kind: input, shape index: {}]   ;;  %s144_s3 = inlined_call_operand.vmem [shape: f32[8,1], index: 3, kind: input, shape index: {}]   ;;  %s145_s4 = inlined_call_operand.hbm [shape: f32[1,8,128], index: 4, kind: output, shape index: {}]  }
   0x1   :  { %v24_v0 = vld [vmem:[%s142_s1] sm:$0xff]  ;;  %70 = vset.pattern.permute.xlu0 %v99_v1 }
   0x2   :  { %9 = vsyncpa [#allocation3], 0  ;;  %32 = vperm.xlu0 %70, %v24_v0   ;;  %v26_v2 = vld [vmem:[%s144_s3] sm:$0xff]  ;;  %s100_s1 = smov [#allocation2]   ;;  %s58_s26 = sshll.u32 %s145_s4, 4  ;;  %s59_s26 = int_to_ptr.hbm [resolvable:$true] %s58_s26 }
   0x3   :  { %v71_v4 = vld [vmem:[%s141_s0] ss:$0 sm:$0xff]  ;;  %s56_s23 = sshll.u32 %s100_s1, 4  ;;  %s57_s23 = int_to_ptr.vmem [resolvable:$true] %s56_s23 }
   0x4   :  { %v72_v6 = vld [vmem:[%s143_s2] ss:$0 sm:$0xff] }
   0xa   :  { %41 = vperm.xlu0 %70, %v26_v2  }
  0x74   :  { %v33_v3 = vpop.permute.xlu0 %32 }
  0x75   :  { %v35_v5 = vsub.f32 %v71_v4, %v33_v3 }
  0x77   :  { %v45_v7 = vmax.f32 %v35_v5, 0.0 }
  0x7c   :  { %v42_v8 = vpop.permute.xlu0 %41 }
  0x7d   :  { %vm44_vm0 = vcmp.lt.f32.partialorder %v72_v6, %v42_v8 }
  0x7e   :  { %v46_v9 = vsel %vm44_vm0, %v45_v7, 0.0 }
  0x7f   :  { %50 = vst [vmem:[#allocation2] sm:$0xff] %v46_v9 }
  0x80   :  { %61 = dma.vmem_to_hbm [thread:$0]  %s57_s23, 128, %s59_s26, [#allocation3]  }
  0x81   :  { %97 = dma.done.wait [#allocation3], 128  }
  0x82   :  { %98 = vsyncadd [#allocation3], 4294967168 }
  0x83   :  { %66 = vsyncpa [#allocation3], 1 }

</bundles_post_ra>
